<compile_context>
chip_gen: v5e
topology: v5e:2x2
jax: 0.10.0
libtpu: 0.0.40
codegen_flags: <defaults>
</compile_context>

<pallas_src>
from functools import partial

import jax
import jax.numpy as jnp
from jax.experimental import pallas as pl
from jax.experimental.pallas import tpu as pltpu


def _round_up(x, m):
    return (x + m - 1) // m * m


def bow_embedding_kernel(x_ref, emb_hi_ref, emb_lo_ref, o_ref, *,
                         v_c, tile_b, tile_hw):
    # x_ref:      (3, tile_b*tile_hw) int32  raw channel values, pixel-major
    # emb_hi_ref: (D, 3*v_c) bf16            table hi half (transposed, padded)
    # emb_lo_ref: (D, 3*v_c) bf16            table lo half (emb - hi)
    # o_ref:      (tile_b, D, tile_hw) f32   NCHW-ordered output block
    tile_n = tile_b * tile_hw
    xv = x_ref[...]                                             # (3, tile_n)

    # Per-channel one-hots: one compare + one bool->bf16 cast per element; the
    # channel offset is folded into where each one-hot lands in the sublane
    # stack (v_c is a multiple of 16 -> the concat is layout-free).
    vocab = jax.lax.broadcasted_iota(jnp.int32, (v_c, tile_n), 0)
    multi_hot = jnp.concatenate(
        [(vocab == xv[c:c + 1, :]).astype(jnp.bfloat16) for c in range(3)],
        axis=0)                                                 # (3*v_c, tile_n)

    # Gather + channel-sum + batch fusion as one MXU matmul; second matmul on
    # the lo half of the table restores full f32 accuracy (MXU has slack).
    acc = jnp.dot(emb_hi_ref[...], multi_hot,
                  preferred_element_type=jnp.float32)           # (D, tile_n) f32
    acc = acc + jnp.dot(emb_lo_ref[...], multi_hot,
                        preferred_element_type=jnp.float32)

    # Static, lane-tile-aligned column slices -> per-image NCHW output rows.
    for b in range(tile_b):
        o_ref[b] = acc[:, b * tile_hw:(b + 1) * tile_hw]


def _choose_tiles(B, HW_pad, D, V_pad, vmem_budget_bytes=28 * 1024 * 1024):
    """Pick (tile_b, tile_hw): lane-dense tiles, bounded VMEM, >=2 grid steps."""
    # Resident bytes per unit of fused streaming length (one pixel column):
    #   f32 out block (double-buffered) + f32 accumulator : D * 4 * 3
    #   bf16 multi-hot                                     : V_pad * 2
    #   int32 input block (double-buffered)                : 3 * 4 * 2
    bytes_per_n = D * 12 + V_pad * 2 + 24
    max_n = max(128, vmem_budget_bytes // bytes_per_n)

    # Spatial (lane) tile: largest multiple of 128 dividing HW_pad, capped at
    # 2048 lanes and at the VMEM budget.
    m = HW_pad // 128
    cap = max(1, min(m, max_n // 128, 16))
    d = 1
    for cand in range(cap, 0, -1):
        if m % cand == 0:
            d = cand
            break
    tile_hw = d * 128

    # Fuse several images per grid step only when one tile already covers the
    # whole padded image (keeps the (3, B*HW_pad) pixel axis contiguous per
    # block); cap at B//2 so v7x's two TensorCores both get work.
    tile_b = 1
    if tile_hw == HW_pad and B > 1:
        max_b = max(1, min(B // 2, max_n // tile_hw, 8))
        for cand in range(max_b, 0, -1):
            if B % cand == 0:
                tile_b = cand
                break
    return tile_b, tile_hw


def image_bow_embedding(x, emb, max_value):
    """x: (B, 3, H, W) int, emb: (3*max_value, D) f32 -> (B, D, H, W) f32."""
    B, C, H, W = x.shape
    assert C == 3, "ImageBOWEmbedding expects 3 input channels"
    V, D = emb.shape
    assert V == 3 * max_value
    HW = H * W
    HW_pad = _round_up(HW, 128)

    # Per-channel vocab slice padded to a full bf16 sublane tile (16) so the
    # in-kernel sublane stack of the three one-hots is layout-free; the padded
    # table rows are zero so they contribute nothing.
    v_c = _round_up(max_value, 16)
    V_pad = 3 * v_c
    table = emb.reshape(3, max_value, D)
    if v_c != max_value:
        table = jnp.pad(table, ((0, 0), (0, v_c - max_value), (0, 0)))
    table = table.reshape(V_pad, D)

    # hi/lo bf16 split: hi + lo ~= f32 table; two f32-accumulated MXU matmuls
    # recover f32 accuracy while keeping cheap bf16 MXU inputs.
    emb_hi = table.astype(jnp.bfloat16)
    emb_lo = (table - emb_hi.astype(jnp.float32)).astype(jnp.bfloat16)
    emb_hi_t = emb_hi.T                      # (D, V_pad), VMEM-resident
    emb_lo_t = emb_lo.T

    # Pixel-major input layout (3, B*HW_pad); pad value 0 is harmless since the
    # padded output columns are sliced off below.
    x_flat = x.reshape(B, C, HW).astype(jnp.int32)
    if HW_pad != HW:
        x_flat = jnp.pad(x_flat, ((0, 0), (0, 0), (0, HW_pad - HW)))
    x_fused = x_flat.transpose(1, 0, 2).reshape(C, B * HW_pad)

    tile_b, tile_hw = _choose_tiles(B, HW_pad, D, V_pad)
    nb, nt = B // tile_b, HW_pad // tile_hw

    def x_index(bi, ti):
        # Fused pixel axis is (batch, spatial) flattened; blocks stay
        # contiguous because tile_b > 1 only when tile_hw == HW_pad (nt == 1).
        return (0, bi * nt + ti)

    out = pl.pallas_call(
        partial(bow_embedding_kernel, v_c=v_c, tile_b=tile_b, tile_hw=tile_hw),
        out_shape=jax.ShapeDtypeStruct((B, D, HW_pad), jnp.float32),
        grid_spec=pl.GridSpec(
            grid=(nb, nt),
            in_specs=[
                pl.BlockSpec((C, tile_b * tile_hw), x_index),
                # Constant block index: tables loaded once, stay VMEM-resident.
                pl.BlockSpec((D, V_pad), lambda bi, ti: (0, 0)),
                pl.BlockSpec((D, V_pad), lambda bi, ti: (0, 0)),
            ],
            out_specs=pl.BlockSpec((tile_b, D, tile_hw),
                                   lambda bi, ti: (bi, 0, ti)),
        ),
        compiler_params=pltpu.CompilerParams(
            dimension_semantics=("parallel", "parallel"),
            vmem_limit_bytes=48 * 1024 * 1024),
    )(x_fused, emb_hi_t, emb_lo_t)

    if HW_pad != HW:
        out = out[:, :, :HW]                 # drop spatial padding
    # (B, D, HW) -> (B, D, H, W): pure metadata reshape, no transpose needed.
    return out.reshape(B, D, H, W)


if __name__ == "__main__":
    max_value = 16
    embedding_dim = 32
    B, C, H, W = 2, 3, 8, 8

    key = jax.random.PRNGKey(0)
    k_emb, k_x = jax.random.split(key)

    # Deterministic synthetic parameters (nn.Embedding(3*max_value, D) weight).
    emb_table = jax.random.normal(
        k_emb, (3 * max_value, embedding_dim), dtype=jnp.float32)

    # Inputs: integer-valued image channels in [0, max_value).
    x = jax.random.randint(k_x, (B, C, H, W), 0, max_value, dtype=jnp.int32)

    out = image_bow_embedding(x, emb_table, max_value)
    out = jax.block_until_ready(out)
    assert out.shape == (B, embedding_dim, H, W)

    # Pure-JAX reference of the PyTorch forward (f32 table).
    offsets = jnp.arange(3, dtype=jnp.int32)[None, :, None, None] * max_value
    idx = x + offsets
    ref = emb_table[idx].sum(axis=1).transpose(0, 3, 1, 2)

    # hi/lo bf16 table split keeps us at ~f32 accuracy vs the PyTorch semantics.
    assert jnp.allclose(out, ref, atol=1e-4, rtol=1e-4), "mismatch vs f32 reference"

    print("KERNEL_OK")
</pallas_src>

<mosaic_0001>
module attributes {stable_mosaic.version = 11 : i64} {
  func.func @bow_embedding_kernel(%arg0: i32, %arg1: i32, %arg2: memref<3x128xi32, #tpu.memory_space<vmem>>, %arg3: memref<32x48xbf16, #tpu.memory_space<vmem>>, %arg4: memref<32x48xbf16, #tpu.memory_space<vmem>>, %arg5: memref<1x32x128xf32, #tpu.memory_space<vmem>>) attributes {dimension_semantics = [#tpu.dimension_semantics<parallel>, #tpu.dimension_semantics<parallel>], iteration_bounds = array<i64: 2, 1>, scalar_prefetch = 0 : i64, scratch_operands = 0 : i64, tpu.core_type = #tpu.core_type<tc>, window_params = [{transform_indices = @transform_0, window_bounds = array<i64: 3, 128>}, {pipeline_mode = #tpu.pipeline_mode<synchronous>, transform_indices = @transform_1, window_bounds = array<i64: 32, 48>}, {pipeline_mode = #tpu.pipeline_mode<synchronous>, transform_indices = @transform_2, window_bounds = array<i64: 32, 48>}, {transform_indices = @transform_3, window_bounds = array<i64: 1, 32, 128>}]} {
    %c0 = arith.constant 0 : index
    %c0_0 = arith.constant 0 : index
    %0 = vector.load %arg2[%c0, %c0_0] : memref<3x128xi32, #tpu.memory_space<vmem>>, vector<3x128xi32>
    %1 = tpu.iota {dimensions = array<i32: 0>} : vector<16x128xi32>
    %2 = vector.extract_strided_slice %0 {offsets = [0, 0], sizes = [1, 128], strides = [1, 1]} : vector<3x128xi32> to vector<1x128xi32>
    %3 = vector.broadcast %2 : vector<1x128xi32> to vector<16x128xi32>
    %4 = arith.cmpi eq, %1, %3 : vector<16x128xi32>
    %5 = arith.extui %4 : vector<16x128xi1> to vector<16x128xi32>
    %6 = arith.sitofp %5 : vector<16x128xi32> to vector<16x128xf32>
    %7 = arith.truncf %6 : vector<16x128xf32> to vector<16x128xbf16>
    %8 = vector.extract_strided_slice %0 {offsets = [1, 0], sizes = [1, 128], strides = [1, 1]} : vector<3x128xi32> to vector<1x128xi32>
    %9 = vector.broadcast %8 : vector<1x128xi32> to vector<16x128xi32>
    %10 = arith.cmpi eq, %1, %9 : vector<16x128xi32>
    %11 = arith.extui %10 : vector<16x128xi1> to vector<16x128xi32>
    %12 = arith.sitofp %11 : vector<16x128xi32> to vector<16x128xf32>
    %13 = arith.truncf %12 : vector<16x128xf32> to vector<16x128xbf16>
    %14 = vector.extract_strided_slice %0 {offsets = [2, 0], sizes = [1, 128], strides = [1, 1]} : vector<3x128xi32> to vector<1x128xi32>
    %15 = vector.broadcast %14 : vector<1x128xi32> to vector<16x128xi32>
    %16 = arith.cmpi eq, %1, %15 : vector<16x128xi32>
    %17 = arith.extui %16 : vector<16x128xi1> to vector<16x128xi32>
    %18 = arith.sitofp %17 : vector<16x128xi32> to vector<16x128xf32>
    %19 = arith.truncf %18 : vector<16x128xf32> to vector<16x128xbf16>
    %20 = tpu.concatenate %7, %13, %19 in 0 : vector<16x128xbf16>, vector<16x128xbf16>, vector<16x128xbf16> -> vector<48x128xbf16>
    %c0_1 = arith.constant 0 : index
    %c0_2 = arith.constant 0 : index
    %21 = vector.load %arg3[%c0_1, %c0_2] : memref<32x48xbf16, #tpu.memory_space<vmem>>, vector<32x48xbf16>
    %cst = arith.constant dense<0.000000e+00> : vector<32x128xf32>
    %22 = tpu.matmul %21, %20, %cst {dimension_numbers = #tpu.dot_dimension_numbers<[1], [0], [0], [1], [0, 0, 1, 1], [], []>} : vector<32x48xbf16>, vector<48x128xbf16>, vector<32x128xf32> -> vector<32x128xf32>
    %c0_3 = arith.constant 0 : index
    %c0_4 = arith.constant 0 : index
    %23 = vector.load %arg4[%c0_3, %c0_4] : memref<32x48xbf16, #tpu.memory_space<vmem>>, vector<32x48xbf16>
    %cst_5 = arith.constant dense<0.000000e+00> : vector<32x128xf32>
    %24 = tpu.matmul %23, %20, %cst_5 {dimension_numbers = #tpu.dot_dimension_numbers<[1], [0], [0], [1], [0, 0, 1, 1], [], []>} : vector<32x48xbf16>, vector<48x128xbf16>, vector<32x128xf32> -> vector<32x128xf32>
    %25 = arith.addf %22, %24 : vector<32x128xf32>
    %c0_6 = arith.constant 0 : index
    %c0_7 = arith.constant 0 : index
    %c0_8 = arith.constant 0 : index
    %26 = vector.load %arg5[%c0_6, %c0_7, %c0_8] : memref<1x32x128xf32, #tpu.memory_space<vmem>>, vector<1x32x128xf32>
    %27 = vector.shape_cast %26 : vector<1x32x128xf32> to vector<32x128xf32>
    %28 = vector.shape_cast %25 : vector<32x128xf32> to vector<1x32x128xf32>
    tpu.vector_store %arg5[%c0_6, %c0_7, %c0_8], %28 {strides = array<i32>} : memref<1x32x128xf32, #tpu.memory_space<vmem>>, vector<1x32x128xf32>,
    return
  }
  func.func @transform_0(%arg0: i32, %arg1: i32) -> (i32, i32) {
    %c1_i32 = arith.constant 1 : i32
    %0 = arith.muli %arg0, %c1_i32 : i32
    %1 = arith.addi %0, %arg1 : i32
    %c0_i32 = arith.constant 0 : i32
    %c0_i32_0 = arith.constant 0 : i32
    return %c0_i32, %1 : i32, i32
  }
  func.func @transform_1(%arg0: i32, %arg1: i32) -> (i32, i32) {
    %c0_i32 = arith.constant 0 : i32
    %c0_i32_0 = arith.constant 0 : i32
    %c0_i32_1 = arith.constant 0 : i32
    return %c0_i32, %c0_i32_0 : i32, i32
  }
  func.func @transform_2(%arg0: i32, %arg1: i32) -> (i32, i32) {
    %c0_i32 = arith.constant 0 : i32
    %c0_i32_0 = arith.constant 0 : i32
    %c0_i32_1 = arith.constant 0 : i32
    return %c0_i32, %c0_i32_0 : i32, i32
  }
  func.func @transform_3(%arg0: i32, %arg1: i32) -> (i32, i32, i32) {
    %c0_i32 = arith.constant 0 : i32
    %c0_i32_0 = arith.constant 0 : i32
    return %arg0, %c0_i32, %arg1 : i32, i32, i32
  }
}

</mosaic_0001>

<bundles_post_ra>
// kernel: tpu_custom_call.1
= control target key start
LH: loop header
LB: loop body
LE: loop exit
PB: predicated region body
PF: predicated region fallthrough
CT: control target
= control target key end

     0   :  { %8 = vsyncpa [#allocation3], 0  ;;  %s985_s0 = inlined_call_operand.hbm [shape: s32[3,256], index: 0, kind: input, shape index: {}]   ;;  %s986_s1 = inlined_call_operand.hbm [shape: bf16[32,48], index: 1, kind: input, shape index: {}]   ;;  %s987_s2 = inlined_call_operand.hbm [shape: bf16[32,48], index: 2, kind: input, shape index: {}]   ;;  %s988_s3 = inlined_call_operand.hbm [shape: f32[2,32,128], index: 3, kind: output, shape index: {}]  }
   0x1   :  { %10 = vsyncpa [#allocation3 + $0x1], 0 }
   0x2   :  { %11 = vsyncpa [#allocation6], 0 }
   0x3   :  { %12 = vsyncpa [#allocation4], 0 }
   0x4   :  { %14 = vsyncpa [#allocation4 + $0x1], 0  ;;  %s840_s12 = smov 0   ;;  %s842_s13 = smov 0  }
   0x5   :  { %s844_s14 = smov 0   ;;  %s846_s15 = smov 0  }
   0x6   :  { %s848_s16 = smov 0   ;;  %s850_s17 = smov 0  }
   0x7 LB: > { %s492_s18 = sadd.s32 4294967295, %s811_s17   ;;  %p494_p0 = scmp.ge.s32.totalorder %s811_s17, 1  ;;  %s811_s17 = sphi %s850_s17, %s20_s17   ;;  %s807_s16 = sphi %s848_s16, %s998_s16   ;;  %s803_s15 = sphi %s846_s15, %s997_s15   ;;  %s799_s14 = sphi %s844_s14, %s996_s14   ;;  %s795_s13 = sphi %s842_s13, %s995_s13   ;;  %s791_s12 = sphi %s840_s12, %s994_s12  }
   0x8   : > { %p874_p1 = scmp.eq.s32.totalorder %s492_s18, 0  ;;  %p135_p2 = scmp.lt.s32.totalorder %s811_s17, 3 }
   0x9   : > { %s146_s22 = sshll.u32 %s986_s1, 4  ;;  %s813_s24 = smov [#allocation5]   ;;  %s147_s22 = int_to_ptr.hbm [resolvable:$true] %s146_s22 }
   0xa   : > { %p882_p3 = pnand %p494_p0, %p135_p2  ;;  %s148_s25 = sshll.u32 %s813_s24, 4  ;;  %s149_s25 = int_to_ptr.vmem [resolvable:$true] %s148_s25 }
   0xb   : > { %p497_p6 = scmp.ge.s32.totalorder %s811_s17, 2  ;;  %s160_s28 = sshll.u32 %s987_s2, 4  ;;  %s161_s28 = int_to_ptr.hbm [resolvable:$true] %s160_s28 }
   0xc   : > { %p559_p4 = pneg %p882_p3  ;;  %s814_s29 = smov 64  }
   0xd   : > { %s815_s30 = smov 4   ;;  %s816_s4 = smov [#allocation7]  }
   0xe   : > { %p560_p5 = pnand %p559_p4, %p874_p1  ;;  %s162_s5 = sshll.u32 %s816_s4, 4  ;;  %s163_s5 = int_to_ptr.vmem [resolvable:$true] %s162_s5 }
   0xf   : > { %s32_s6 = sadd.s32 1, %s807_s16  ;;  %s493_s7 = sadd.s32 4294967294, %s811_s17  }
  0x10   : > { %562 = dma.hbm_to_vmem [thread:$0]  (!%p560_p5), %s147_s22, 256, %s149_s25, [#allocation6], %s814_s29, %s814_s29, %s815_s30  }
  0x11   : > { %565 = dma.hbm_to_vmem [thread:$0]  (!%p560_p5), %s161_s28, 256, %s163_s5, [#allocation6], %s814_s29, %s814_s29, %s815_s30  }
  0x12   : > { %p34_p7 = scmp.ge.s32.totalorder %s32_s6, 2  ;;  %s41_s8 = sadd.s32 1, %s799_s14 }
  0x13   : > { %p48_p8 = scmp.ne.s32.totalorder %s799_s14, %s795_s13  ;;  %p49_p9 = scmp.eq.s32.totalorder %s811_s17, 0 }
  0x14   : > { %s1000_s6 = smov (%p34_p7, %s32_s6), 0  ;;  %p54_p10 = scmp.ne.s32.totalorder %s795_s13, %s791_s12 }
  0x15   : > { %s38_s9 = ssub.s32 %s807_s16, %s1000_s6  ;;  %p122_p11 = scmp.eq.s32.totalorder %s492_s18, 1 }
  0x16   : > { %p39_p12 = scmp.eq.s32.totalorder %s38_s9, 0  ;;  %p910_p13 = por %p874_p1, %p54_p10 }
  0x17   : > { %p914_p0 = por %p122_p11, %p48_p8  ;;  %p128_p2 = scmp.eq.s32.totalorder %s493_s7, 1 }
  0x18   : > { %s919_s20 = scalar_select %p39_p12, %s799_s14, %s41_s8  }
  0x19   : > { %p50_p4 = por %p49_p9, %p48_p8  ;;  %p921_p5 = por %p128_p2, %p54_p10 }
  0x1a   : > { %s176_s22 = sand.u32 1, %s799_s14   ;;  %s499_s18 = sshll.u32 %s807_s16, 2 }
  0x1b   : > { %p576_p7 = scmp.lt.s32.totalorder %s811_s17, 2  ;;  %s498_s24 = sshll.u32 %s176_s22, 2 }
  0x1c   : > { %s185_s27 = scalar_lea.hbm %s985_s0, %s499_s18  ;;  %s180_s29 = scalar_lea.vmem [#allocation2], %s498_s24 }
  0x1d   : > { %s187_s28 = sshll.u32 %s185_s27, 4  ;;  %s189_s30 = sshll.u32 %s180_s29, 4  ;;  %s188_s28 = int_to_ptr.hbm [resolvable:$true] %s187_s28  ;;  %s190_s30 = int_to_ptr.vmem [resolvable:$true] %s189_s30 }
  0x1e   : > { %p567_p11 = pnand %p576_p7, %p50_p4  ;;  %s177_s4 = scalar_lea.sflag [#allocation3], %s176_s22 }
  0x1f   : > { %198 = sbr.rel (%p882_p3) target bundleno = 211 (0xd3), region = 32  ;;  %s934_s5 = sand.u32 (!%p882_p3), 1, %s795_s13  }
  0x20   : > { %569 = dma.hbm_to_vmem [thread:$0]  (!%p567_p11), %s188_s28, 64, %s190_s30, %s177_s4  }
  0x21   : > { %s501_s7 = sshll.u32 (!%p882_p3), %s934_s5, 2  ;;  %s201_s8 = scalar_lea.sflag (!%p882_p3), [#allocation3], %s934_s5 }
  0x22   : > { %s204_s9 = scalar_lea.vmem (!%p882_p3), [#allocation2], %s501_s7 }
  0x24   : > { %778 = dma.done.wait (%p910_p13), %s201_s8, 64  }
  0x25   : > { %780 = vsyncadd (%p910_p13), %s201_s8, 4294967232 }
  0x26   : > { %782 = dma.done.wait (%p874_p1), [#allocation6], 512  }
  0x27   : > { %784 = vsyncadd (%p874_p1), [#allocation6], 4294966784  ;;  %v241_v0 = vlaneseq  ;;  %v240_v3 = vld [vmem:[%s204_s9] sm:$0x7]  ;;  %v817_v7 = vmov 0.0   ;;  %v538_v29 = vld [vmem:[#allocation7] sm:$0xff] }
  0x28   : > { %v262_v4 = vperm.slane %v240_v3, 2  ;;  %v253_v5 = vperm.slane %v240_v3, 1  ;;  %v244_v6 = vperm.slane %v240_v3, 0  ;;  %v539_v30 = vld [vmem:[#allocation7 + $0x8] sm:$0xff]  ;;  %vm307_vm6 = vcmask 392192   ;;  %v536_v31 = vld [vmem:[#allocation5] sm:$0xff] }
  0x29   : > { %v242_v1 = vshrl.u32 %v241_v0, 7  ;;  %v537_v32 = vld [vmem:[#allocation5 + $0x8] sm:$0xff]  ;;  %s504_s19 = sshll.u32 %s934_s5, 5  ;;  %s540_s10 = sshll.u32 %s803_s15, 5 }
  0x2a   : > { %s237_s23 = scalar_lea.vmem [#allocation8], %s504_s19  ;;  %s385_s24 = scalar_lea.hbm %s988_s3, %s540_s10 }
  0x2b   : > { %v243_v2 = vadd.s32 8, %v242_v1  ;;  %vm263_vm0 = vcmp.eq.s32.totalorder %v242_v1, %v262_v4  ;;  %vm254_vm2 = vcmp.eq.s32.totalorder %v242_v1, %v253_v5  ;;  %vm245_vm4 = vcmp.eq.s32.totalorder %v242_v1, %v244_v6  ;;  %s386_s25 = sshll.u32 %s237_s23, 4  ;;  %s388_s26 = sshll.u32 %s385_s24, 4  ;;  %s387_s25 = int_to_ptr.vmem [resolvable:$true] %s386_s25  ;;  %s389_s26 = int_to_ptr.hbm [resolvable:$true] %s388_s26 }
  0x2c   : > { %v509_v8 = vsel %vm263_vm0, 1.0, %v817_v7  ;;  %v507_v10 = vsel %vm254_vm2, 1.0, %v817_v7  ;;  %v505_v20 = vsel %vm245_vm4, 1.0, %v817_v7  ;;  %s373_s15 = scalar_lea.sflag [#allocation4], %s934_s5  ;;  %s739_s27 = sshra.s32 %s389_s26, 4  ;;  %s740_s27 = int_to_ptr.hbm [resolvable:$true] %s739_s27 }
  0x2d   : > { %vm264_vm1 = vcmp.eq.s32.totalorder %v243_v2, %v262_v4  ;;  %vm255_vm3 = vcmp.eq.s32.totalorder %v243_v2, %v253_v5  ;;  %v269_v12 = vpack.c.bf16 %v509_v8, %v509_v8  ;;  %v260_v14 = vpack.c.bf16 %v507_v10, %v507_v10  ;;  %s741_s28 = scalar_lea.hbm %s740_s27, 32  ;;  %s745_s4 = scalar_lea.hbm %s988_s3, 64 }
  0x2e   : > { %v510_v9 = vsel %vm264_vm1, 1.0, %v817_v7  ;;  %v508_v11 = vsel %vm255_vm3, 1.0, %v817_v7  ;;  %vm246_vm5 = vcmp.eq.s32.totalorder %v243_v2, %v244_v6  ;;  %v251_v23 = vpack.c.bf16 %v505_v20, %v505_v20  ;;  %p742_p1 = scmp.ne.s32.totalorder %s740_s27, %s741_s28  ;;  %p746_p9 = scmp.lt.s32.totalorder %s740_s27, %s988_s3 }
  0x2f   : > { %v270_v13 = vpack.c.bf16 %v510_v9, %v510_v9  ;;  %v261_v15 = vpack.c.bf16 %v508_v11, %v508_v11  ;;  %v285_v16 = vunpack.c.l.b16 %v269_v12  ;;  %v279_v18 = vunpack.c.l.b16 %v260_v14  ;;  %p747_p10 = scmp.lt.s32.totalorder %s745_s4, %s741_s28 }
  0x30   : > { %v506_v21 = vsel %vm246_vm5, 1.0, %v817_v7  ;;  %v273_v26 = vunpack.c.l.b16 %v251_v23  ;;  %p743_p3 = pnand %p742_p1, %p914_p0 }
  0x31   : > { %v286_v17 = vunpack.c.l.b16 %v270_v13  ;;  %v280_v19 = vunpack.c.l.b16 %v261_v15  ;;  %v252_v24 = vpack.c.bf16 %v506_v21, %v506_v21  ;;  %p748_p12 = por %p747_p10, %p746_p9 }
  0x32   : > { %p744_p8 = pneg %p743_p3 }
  0x33   : > { %v287_v22 = vpack.c.b16 %v286_v17, %v285_v16  ;;  %v281_v25 = vpack.c.b16 %v280_v19, %v279_v18  ;;  %v274_v27 = vunpack.c.l.b16 %v252_v24 }
  0x34   : > { %p749_p13 = pnand %p748_p12, %p744_p8 }
  0x35   : > { %319 = vmatpush.bf16.msra.mxu0 %v287_v22  ;;  %541 = vmatpush.bf16.msra.mxu2 %v287_v22  ;;  %v275_v28 = vpack.c.b16 %v274_v27, %v273_v26 }
  0x36   : > { %354 = vmatpush.bf16.msra.mxu1 %v287_v22  ;;  %544 = vmatpush.bf16.msra.mxu3 %v287_v22 }
  0x39   : > { %320 = vmatpush.bf16.msra.mxu0 %v281_v25  ;;  %542 = vmatpush.bf16.msra.mxu2 %v281_v25 }
  0x3a   : > { %355 = vmatpush.bf16.msra.mxu1 %v281_v25  ;;  %545 = vmatpush.bf16.msra.mxu3 %v281_v25 }
  0x3d   : > { %321 = vmatpush.bf16.msra.mxu0 %v275_v28  ;;  %543 = vmatpush.bf16.msra.mxu2 %v275_v28 }
  0x3e   : > { %356 = vmatpush.bf16.msra.mxu1 %v275_v28  ;;  %546 = vmatpush.bf16.msra.mxu3 %v275_v28 }
  0x40   : > { %519 = vmatmul.msk.bf16.vlgmr.msra.gmra.mxu0 %vm307_vm6, %v538_v29  ;;  %520 = vmatmul.msk.bf16.vlgmr.msra.gmra.mxu2 %vm307_vm6, %v539_v30 }
  0x41   : > { %529 = vmatmul.msk.bf16.vlgmr.msra.gmra.mxu1 %vm307_vm6, %v536_v31  ;;  %530 = vmatmul.msk.bf16.vlgmr.msra.gmra.mxu3 %vm307_vm6, %v537_v32 }
  0xbd   : > { %v323_v33 = vpop.f32.mrf.mxu0 }
  0xbe   : > { %v358_v34 = vpop.f32.mrf.mxu1 }
  0xbf   : > { %v359_v35 = vadd.f32 %v358_v34, %v323_v33 }
  0xc1   : > { %368 = vst [vmem:[%s237_s23] sm:$0xff] %v359_v35 }
  0xc3   : > { %v328_v36 = vpop.f32.mrf.mxu2 }
  0xc4   : > { %v363_v37 = vpop.f32.mrf.mxu3 }
  0xc5   : > { %v364_v38 = vadd.f32 %v363_v37, %v328_v36  ;;  %v325_v39 = vpop.f32.mrf.mxu0 }
  0xc6   : > { %v360_v40 = vpop.f32.mrf.mxu1 }
  0xc7   : > { %370 = vst [vmem:[%s237_s23 + $0x10] sm:$0xff] %v364_v38  ;;  %v361_v41 = vadd.f32 %v360_v40, %v325_v39 }
  0xc9   : > { %369 = vst [vmem:[%s237_s23 + $0x8] sm:$0xff] %v361_v41 }
  0xcb   : > { %v330_v42 = vpop.f32.mrf.mxu2 }
  0xcc   : > { %v365_v43 = vpop.f32.mrf.mxu3 }
  0xcd   : > { %v366_v44 = vadd.f32 %v365_v43, %v330_v42 }
  0xcf   : > { %371 = vst [vmem:[%s237_s23 + $0x18] sm:$0xff] %v366_v44 }
  0xd0   : > { %752 = shalt.err (!%p749_p13)
}
  0xd1   : > { %s818_s5 = smov 128   ;;  %s819_s9 = smov 8  }
  0xd2   : > { %557 = dma.vmem_to_hbm [thread:$0]  (%p914_p0), %s387_s25, 512, %s389_s26, %s373_s15, %s818_s5, %s818_s5, %s819_s9  }
  0xd3 PF: > { %s403_s19 = sand.u32 1, %s791_s12   ;;  %p571_p2 = pnand %p497_p6, %p921_p5 }
  0xd4   : > { %s404_s23 = scalar_lea.sflag [#allocation4], %s403_s19 }
  0xd5   : > { %p572_p4 = pneg %p571_p2 }
  0xd7   : > { %786 = dma.done.wait (%p572_p4), %s404_s23, 512  }
  0xd8   : > { %788 = vsyncadd (%p572_p4), %s404_s23, 4294966784  ;;  %s20_s17 = sadd.s32 1, %s811_s17   ;;  %s994_s12 = smov %s795_s13 }
  0xd9   : > { %p17_p7 = scmp.ge.s32.totalorder %s20_s17, 4   ;;  %s995_s13 = smov %s799_s14 }
  0xda   : > { %s996_s14 = smov %s919_s20  ;;  %s997_s15 = smov %s807_s16 }
  0xdb   : > { %s998_s16 = smov %s1000_s6  ;;  %19 = sbr.rel (!%p17_p7) target bundleno = 7 (0x7), region = 85 }
  0xe0   :  { %410 = vsyncpa [#allocation3], 1 }
  0xe1   :  { %412 = vsyncpa [#allocation3 + $0x1], 1 }
  0xe2   :  { %413 = vsyncpa [#allocation6], 1 }
  0xe3   :  { %414 = vsyncpa [#allocation4], 1 }
  0xe4   :  { %416 = vsyncpa [#allocation4 + $0x1], 1 }

</bundles_post_ra>
